<compile_context>
chip_gen: v7x
topology: tpu7x:2x2x1
jax: 0.10.0
libtpu: 0.0.40
codegen_flags: <defaults>
</compile_context>

<pallas_src>
import functools

import jax
import jax.numpy as jnp
from jax.experimental import pallas as pl
from jax.experimental.pallas import tpu as pltpu


MXU_DTYPE = jnp.bfloat16          # MXU operand + activation carry dtype (f32 accumulation)
_VMEM_CAP = 48 * 1024 * 1024      # never hint above this (safe on v7x's 64 MiB per-TC VMEM)


def _round_up(x, m):
    return ((x + m - 1) // m) * m


def _pad2d(a, rows, cols):
    r, c = a.shape
    if r == rows and c == cols:
        return a
    return jnp.pad(a, ((0, rows - r), (0, cols - c)))


def _compiler_params(dims, footprint_bytes):
    """Per-call VMEM hint sized from the tile footprint (x2 headroom, 16 MiB floor)."""
    limit = int(min(_VMEM_CAP, max(2 * footprint_bytes, 16 * 1024 * 1024)))
    return pltpu.CompilerParams(dimension_semantics=dims, vmem_limit_bytes=limit)


# ----------------------------- Pallas kernels -----------------------------

def _gelu(x):
    # TODO(synk): PyTorch nn.GELU() default is exact erf-GELU; tanh-approx used here
    # (erf lowering availability in Mosaic is not guaranteed); max diff ~1e-3.
    c = jnp.sqrt(2.0 / jnp.pi).astype(x.dtype)
    return 0.5 * x * (1.0 + jnp.tanh(c * (x + 0.044715 * x * x * x)))


def _matmul_kernel(*refs, act, has_res):
    if has_res:
        x_ref, w_ref, b_ref, r_ref, o_ref, acc_ref = refs
    else:
        x_ref, w_ref, b_ref, o_ref, acc_ref = refs
        r_ref = None
    k = pl.program_id(2)

    @pl.when(k == 0)
    def _():
        acc_ref[...] = jnp.zeros_like(acc_ref)

    acc_ref[...] += jnp.dot(x_ref[...], w_ref[...],
                            preferred_element_type=jnp.float32)

    @pl.when(k == pl.num_programs(2) - 1)
    def _():
        y = acc_ref[...] + b_ref[...].astype(jnp.float32)
        if act == "gelu":
            y = _gelu(y)
        if has_res:
            y = y + r_ref[...].astype(jnp.float32)
        o_ref[...] = y.astype(o_ref.dtype)


def linear(x2d, w, b, act=None, residual=None):
    """Tiled MXU matmul: x2d (M,K) @ w (K,N) + b, optional fused GELU / residual add.

    Operands (and residual/bias) are bf16, accumulation is f32 in VMEM scratch, and the
    output is stored as bf16.  M padded to a tm multiple (tm rounded to 128), N/K padded
    to 128 multiples so every store is lane-dense and every tile is (8,128)-aligned.
    """
    M, K = x2d.shape
    N = w.shape[1]
    tm = min(512, _round_up(M, 128))
    tn = min(1024, _round_up(N, 128))
    tk = min(1024, _round_up(K, 128))
    Mp, Np, Kp = _round_up(M, tm), _round_up(N, tn), _round_up(K, tk)

    xp = _pad2d(x2d, Mp, Kp).astype(MXU_DTYPE)
    wp = _pad2d(w, Kp, Np).astype(MXU_DTYPE)
    bp = _pad2d(b.reshape(1, N), 1, Np).astype(MXU_DTYPE)

    in_arrays = [xp, wp, bp]
    in_specs = [
        pl.BlockSpec((tm, tk), lambda i, j, k: (i, k)),
        pl.BlockSpec((tk, tn), lambda i, j, k: (k, j)),
        pl.BlockSpec((1, tn), lambda i, j, k: (0, j)),
    ]
    has_res = residual is not None
    if has_res:
        rp = _pad2d(residual, Mp, Np).astype(MXU_DTYPE)
        in_arrays.append(rp)
        in_specs.append(pl.BlockSpec((tm, tn), lambda i, j, k: (i, j)))

    # per-step VMEM footprint (double-buffered blocked operands + f32 accumulator)
    footprint = (2 * tm * tk * 2 + 2 * tk * tn * 2 + 2 * tn * 2
                 + 2 * tm * tn * 2 + tm * tn * 4)
    if has_res:
        footprint += 2 * tm * tn * 2

    out = pl.pallas_call(
        functools.partial(_matmul_kernel, act=act, has_res=has_res),
        out_shape=jax.ShapeDtypeStruct((Mp, Np), MXU_DTYPE),
        grid_spec=pltpu.PrefetchScalarGridSpec(
            num_scalar_prefetch=0,
            grid=(Mp // tm, Np // tn, Kp // tk),
            in_specs=in_specs,
            out_specs=pl.BlockSpec((tm, tn), lambda i, j, k: (i, j)),
            scratch_shapes=[pltpu.VMEM((tm, tn), jnp.float32)],
        ),
        compiler_params=_compiler_params(
            ("parallel", "parallel", "arbitrary"), footprint),
    )(*in_arrays)
    return out[:M, :N]


def _layernorm_kernel(x_ref, g_ref, b_ref, o_ref, *, eps):
    x = x_ref[...].astype(jnp.float32)
    mu = jnp.mean(x, axis=-1, keepdims=True)
    var = jnp.mean(jnp.square(x - mu), axis=-1, keepdims=True)
    y = (x - mu) * jax.lax.rsqrt(var + eps)
    o_ref[...] = (y * g_ref[...] + b_ref[...]).astype(o_ref.dtype)


def layernorm(x, g, b, eps):
    """Row-tiled LayerNorm over the last axis.  bf16 I/O, f32 statistics."""
    shp = x.shape
    C = shp[-1]
    x2 = x.reshape(-1, C)
    R = x2.shape[0]
    # with narrow C (<128 lanes) use taller row tiles so each block still moves real bytes
    tr = min(4096 if C < 128 else 1024, _round_up(R, 8))
    Rp = _round_up(R, tr)
    xp = jnp.pad(x2, ((0, Rp - R), (0, 0))) if Rp != R else x2
    in_bytes = xp.dtype.itemsize
    footprint = 2 * tr * C * in_bytes + 2 * tr * C * 2 + 4 * C * 4
    y = pl.pallas_call(
        functools.partial(_layernorm_kernel, eps=eps),
        out_shape=jax.ShapeDtypeStruct((Rp, C), MXU_DTYPE),
        grid=(Rp // tr,),
        in_specs=[
            pl.BlockSpec((tr, C), lambda i: (i, 0)),
            pl.BlockSpec((1, C), lambda i: (0, 0)),
            pl.BlockSpec((1, C), lambda i: (0, 0)),
        ],
        out_specs=pl.BlockSpec((tr, C), lambda i: (i, 0)),
        compiler_params=_compiler_params(("parallel",), footprint),
    )(xp, g.reshape(1, C).astype(jnp.float32), b.reshape(1, C).astype(jnp.float32))
    return y[:R].reshape(shp)


def _attn_kernel(q_ref, k_ref, v_ref, o_ref, *, scale):
    q = q_ref[...]                    # (gh, N, E) bf16
    k = k_ref[...]                    # (gh, M, E) bf16
    v = v_ref[...]                    # (gh, M, E) bf16
    s = jnp.einsum("bqd,bkd->bqk", q, k,
                   preferred_element_type=jnp.float32) * scale
    s = s - jnp.max(s, axis=-1, keepdims=True)
    p = jnp.exp(s)
    denom = jnp.sum(p, axis=-1, keepdims=True)
    o = jnp.einsum("bqk,bkd->bqd", p.astype(v.dtype), v,
                   preferred_element_type=jnp.float32)
    # normalize the (N,E) output instead of the (N,M) probability tile; reciprocal on EUP
    o = o * pl.reciprocal(denom, approx=True)
    o_ref[...] = o.astype(o_ref.dtype)


def _attn_head_bytes(N, M, E):
    # per-head VMEM footprint: bf16 q/k/v/out double-buffered + f32 score/exp + bf16 p copy
    return (2 * 2 * (N * E + 2 * M * E)      # q, k, v inputs, x2 buffers
            + 2 * 2 * N * E                  # bf16 output, x2 buffers
            + 2 * 4 * N * M + 2 * N * M      # f32 scores + exp, bf16 p for the PV matmul
            + 4 * N * E)                     # f32 PV accumulation


def _pick_head_group(BH, N, M, E, budget):
    """Largest divisor of BH whose footprint fits `budget` while keeping the grid >= 2."""
    per = _attn_head_bytes(N, M, E)
    best = 1
    for g in range(1, BH + 1):
        if BH % g:
            continue
        if g * per > budget:
            break
        if BH // g >= 2 or BH == 1:
            best = g
    return best, per


def attention_core(q, k, v, scale):
    """q: (BH, N, E), k/v: (BH, M, E) -> (BH, N, E) bf16.  Heads grouped per grid step."""
    BH, N, E = q.shape
    M = k.shape[1]
    q = q.astype(MXU_DTYPE)
    k = k.astype(MXU_DTYPE)
    v = v.astype(MXU_DTYPE)
    gh, per = _pick_head_group(BH, N, M, E, budget=24 << 20)
    # TODO(synk): flash-style q/kv tiling with online softmax for real SegFormer sequence
    # lengths (dense (N,M) score block does not fit VMEM at stage-0/1 full resolution).
    return pl.pallas_call(
        functools.partial(_attn_kernel, scale=scale),
        out_shape=jax.ShapeDtypeStruct((BH, N, E), MXU_DTYPE),
        grid=(BH // gh,),
        in_specs=[
            pl.BlockSpec((gh, N, E), lambda i: (i, 0, 0)),
            pl.BlockSpec((gh, M, E), lambda i: (i, 0, 0)),
            pl.BlockSpec((gh, M, E), lambda i: (i, 0, 0)),
        ],
        out_specs=pl.BlockSpec((gh, N, E), lambda i: (i, 0, 0)),
        compiler_params=_compiler_params(("parallel",), gh * per),
    )(q, k, v)


def _dwconv_kernel(x_ref, w_ref, b_ref, o_ref):
    # x_ref: (1, SH+2, W+2, C) bf16 padded strip; w_ref: (9, C); b_ref: (1, C)
    # o_ref: (1, SH, W, C) bf16
    SH, W = o_ref.shape[1], o_ref.shape[2]
    x = x_ref[0].astype(jnp.float32)
    acc = jnp.zeros(o_ref.shape[1:], jnp.float32)
    t = 0
    for dy in range(3):
        for dx in range(3):
            # TODO(synk): form taps with pltpu.roll (XLU slot) instead of sublane-misaligned
            # static slices to remove the per-tap VMEM relayout copy.
            acc = acc + x[dy:dy + SH, dx:dx + W, :] * w_ref[t]
            t += 1
    acc = acc + b_ref[...]
    o_ref[0] = _gelu(acc).astype(o_ref.dtype)   # GELU fused after conv


def dwconv3x3_gelu(x_bhwc, w9c, b):
    """Depthwise 3x3 conv (padding=1, groups=C) + GELU.  bf16 I/O, f32 MAC chain.

    Tiled over row strips with a 1-row halo when a whole padded image would exceed the
    VMEM budget; strips are formed on the host side (small overlap overhead).
    """
    B, H, W, C = x_bhwc.shape
    xp = jnp.pad(x_bhwc.astype(MXU_DTYPE), ((0, 0), (1, 1), (1, 1), (0, 0)))

    def strip_bytes(sh):
        return (2 * (sh + 2) * (W + 2) * C * 2   # padded input strip, double buffered
                + 2 * sh * W * C * 2             # bf16 output, double buffered
                + sh * W * C * 4                 # f32 accumulator
                + 9 * C * 4 + C * 4)             # weights + bias

    budget = 24 << 20
    SH = H
    if strip_bytes(SH) > budget:
        SH = 1
        for s in range(1, H + 1):
            if H % s == 0 and strip_bytes(s) <= budget:
                SH = s
    nstrips = H // SH
    if nstrips == 1:
        strips = xp                                               # (B, H+2, W+2, C)
    else:
        # TODO(synk): replace the overlapping-strip HBM materialization with pl.Element
        # halo indexing on the padded image once validated.
        strips = jnp.stack([xp[:, s * SH:s * SH + SH + 2] for s in range(nstrips)],
                           axis=1).reshape(B * nstrips, SH + 2, W + 2, C)
    Bn = B * nstrips

    out = pl.pallas_call(
        _dwconv_kernel,
        out_shape=jax.ShapeDtypeStruct((Bn, SH, W, C), MXU_DTYPE),
        grid=(Bn,),
        in_specs=[
            pl.BlockSpec((1, SH + 2, W + 2, C), lambda i: (i, 0, 0, 0)),
            pl.BlockSpec((9, C), lambda i: (0, 0)),
            pl.BlockSpec((1, C), lambda i: (0, 0)),
        ],
        out_specs=pl.BlockSpec((1, SH, W, C), lambda i: (i, 0, 0, 0)),
        compiler_params=_compiler_params(("parallel",), strip_bytes(SH)),
    )(strips, w9c.astype(jnp.float32), b.reshape(1, C).astype(jnp.float32))
    return out.reshape(B, H, W, C)


# ----------------------------- conv via im2col + Pallas matmul -----------------------------

def conv2d_nchw(x_nchw, w_oikk, b, stride, padding):
    """nn.Conv2d semantics. x: (B, Cin, H, W), w: (Cout, Cin, k, k) -> (B, Ho, Wo, Cout)."""
    B, Cin, H, W = x_nchw.shape
    Cout, _, kh, kw = w_oikk.shape
    # cast to bf16 BEFORE im2col so the kh*kw-fold patch expansion is half the HBM traffic
    x = jnp.transpose(x_nchw, (0, 2, 3, 1)).astype(MXU_DTYPE)     # NHWC bf16
    xp = jnp.pad(x, ((0, 0), (padding, padding), (padding, padding), (0, 0)))
    Ho = (H + 2 * padding - kh) // stride + 1
    Wo = (W + 2 * padding - kw) // stride + 1
    # TODO(synk): stream the patch extraction into the matmul (tap-indexed BlockSpec /
    # PrefetchScalarGridSpec) instead of materializing (B*Ho*Wo, k*k*Cin) in HBM.
    cols = []
    for dy in range(kh):
        for dx in range(kw):
            cols.append(xp[:, dy:dy + (Ho - 1) * stride + 1:stride,
                           dx:dx + (Wo - 1) * stride + 1:stride, :])
    patches = jnp.stack(cols, axis=3)                             # (B, Ho, Wo, kh*kw, Cin)
    patches = patches.reshape(B * Ho * Wo, kh * kw * Cin)
    w2 = jnp.transpose(w_oikk, (2, 3, 1, 0)).reshape(kh * kw * Cin, Cout)
    y = linear(patches, w2, b)                                    # Pallas tiled MXU matmul
    return y.reshape(B, Ho, Wo, Cout)


# ----------------------------- model modules -----------------------------

def efficient_self_attention(x, p, h, w, num_heads, sr_ratio, residual):
    B, N, C = x.shape
    E = C // num_heads
    q = linear(x.reshape(B * N, C), p["q_w"], p["q_b"]).reshape(B, N, C)
    if sr_ratio > 1:
        xs = x.reshape(B, h, w, C).transpose(0, 3, 1, 2)          # b (h w) c -> b c h w
        xs = conv2d_nchw(xs, p["sr_w"], p["sr_b"], stride=sr_ratio, padding=0)
        xs = xs.reshape(B, -1, C)
        xs = layernorm(xs, p["sr_ng"], p["sr_nb"], eps=1e-5)
    else:
        xs = x
    M = xs.shape[1]
    kv = linear(xs.reshape(B * M, C), p["kv_w"], p["kv_b"]).reshape(B, M, 2, num_heads, E)
    # TODO(synk): fold the head split into attention_core (heads grid axis with paired
    # heads for a 128-wide lane block) to drop these XLA transposes; unsafe for E<128 now.
    k = kv[:, :, 0].transpose(0, 2, 1, 3).reshape(B * num_heads, M, E)
    v = kv[:, :, 1].transpose(0, 2, 1, 3).reshape(B * num_heads, M, E)
    qh = q.reshape(B, N, num_heads, E).transpose(0, 2, 1, 3).reshape(B * num_heads, N, E)
    o = attention_core(qh, k, v, scale=float(E) ** -0.5)
    o = o.reshape(B, num_heads, N, E).transpose(0, 2, 1, 3).reshape(B, N, C)
    # output projection with the residual add fused into the matmul epilogue
    o = linear(o.reshape(B * N, C), p["proj_w"], p["proj_b"],
               residual=residual.reshape(B * N, C)).reshape(B, N, C)
    return o                                                       # dropout_p = 0 -> identity


def mix_feedforward(x, p, h, w, residual):
    B, N, C = x.shape
    Hf = p["fc1_w"].shape[1]
    y = linear(x.reshape(B * N, C), p["fc1_w"], p["fc1_b"]).reshape(B, h, w, Hf)
    y = dwconv3x3_gelu(y, p["dw_w"], p["dw_b"])                    # conv + GELU fused
    y = y.reshape(B * N, Hf)
    # fc2 with the residual add fused into the matmul epilogue
    y = linear(y, p["fc2_w"], p["fc2_b"],
               residual=residual.reshape(B * N, C)).reshape(B, N, C)
    return y                                                       # dropout_p = 0 -> identity


def transformer_block(x, p, h, w, num_heads, sr_ratio):
    y = layernorm(x, p["n1_g"], p["n1_b"], eps=1e-6)
    x = efficient_self_attention(y, p["attn"], h, w, num_heads, sr_ratio, residual=x)
    y = layernorm(x, p["n2_g"], p["n2_b"], eps=1e-6)
    x = mix_feedforward(y, p["ffn"], h, w, residual=x)             # drop_path identity
    return x


def mix_transformer_forward(params, x_nchw):
    outputs = []
    x = x_nchw
    for sp in params["stages"]:
        cfg = sp["cfg"]
        # overlap_patch_embed
        y = conv2d_nchw(x, sp["pe_w"], sp["pe_b"],
                        stride=cfg["stride"], padding=cfg["patch_size"] // 2)
        B, Ho, Wo, C = y.shape
        tok = y.reshape(B, Ho * Wo, C)                             # b c h w -> b (h w) c
        tok = layernorm(tok, sp["pe_ng"], sp["pe_nb"], eps=1e-5)
        # transformer blocks
        for bp in sp["blocks"]:
            tok = transformer_block(tok, bp, Ho, Wo, cfg["num_heads"], cfg["sr_ratio"])
        # stage norm + back to NCHW
        tok = layernorm(tok, sp["norm_g"], sp["norm_b"], eps=1e-6)
        x = tok.reshape(B, Ho, Wo, C).transpose(0, 3, 1, 2)        # b (h w) c -> b c h w
        outputs.append(x.astype(jnp.float32))                      # f32 stage output
        # keep the bf16 tensor as the next stage's input (it is cast to bf16 there anyway)
    return outputs


# ----------------------------- deterministic parameter init -----------------------------

class _KeyGen:
    def __init__(self, key):
        self._key = key

    def __call__(self):
        self._key, sub = jax.random.split(self._key)
        return sub


def init_params(key, in_chans, embed_dims, num_heads, depths, sr_ratios):
    kg = _KeyGen(key)
    std = 0.02

    def dense(cin, cout):
        return std * jax.random.normal(kg(), (cin, cout), jnp.float32)

    def conv_w(cout, cin, k):
        return std * jax.random.normal(kg(), (cout, cin, k, k), jnp.float32)

    def zeros(n):
        return jnp.zeros((n,), jnp.float32)

    def ones(n):
        return jnp.ones((n,), jnp.float32)

    stages = []
    for si in range(len(depths)):
        if si == 0:
            patch_size, stride, cin = 7, 4, in_chans
        else:
            patch_size, stride, cin = 3, 2, embed_dims[si - 1]
        dim = embed_dims[si]
        sp = {
            "cfg": {"patch_size": patch_size, "stride": stride,
                    "num_heads": num_heads[si], "sr_ratio": sr_ratios[si]},
            "pe_w": conv_w(dim, cin, patch_size), "pe_b": zeros(dim),
            "pe_ng": ones(dim), "pe_nb": zeros(dim),
            "norm_g": ones(dim), "norm_b": zeros(dim),
            "blocks": [],
        }
        for _ in range(depths[si]):
            attn = {
                "q_w": dense(dim, dim), "q_b": zeros(dim),
                "kv_w": dense(dim, 2 * dim), "kv_b": zeros(2 * dim),
                "proj_w": dense(dim, dim), "proj_b": zeros(dim),
            }
            if sr_ratios[si] > 1:
                attn["sr_w"] = conv_w(dim, dim, sr_ratios[si])
                attn["sr_b"] = zeros(dim)
                attn["sr_ng"] = ones(dim)
                attn["sr_nb"] = zeros(dim)
            hidden = dim * 4
            ffn = {
                "fc1_w": dense(dim, hidden), "fc1_b": zeros(hidden),
                "dw_w": std * jax.random.normal(kg(), (9, hidden), jnp.float32),
                "dw_b": zeros(hidden),
                "fc2_w": dense(hidden, dim), "fc2_b": zeros(dim),
            }
            sp["blocks"].append({
                "n1_g": ones(dim), "n1_b": zeros(dim),
                "n2_g": ones(dim), "n2_b": zeros(dim),
                "attn": attn, "ffn": ffn,
            })
        stages.append(sp)
    return {"stages": stages}


# ----------------------------- main -----------------------------

IN_CHANS = 4
EMBED_DIMS = (16, 32)
NUM_HEADS = (1, 2)
DEPTHS = (1, 1)
SR_RATIOS = (2, 1)

if __name__ == "__main__":
    key = jax.random.PRNGKey(0)
    pkey, xkey = jax.random.split(key)
    params = init_params(pkey, IN_CHANS, EMBED_DIMS, NUM_HEADS, DEPTHS, SR_RATIOS)
    x = jax.random.normal(xkey, (2, IN_CHANS, 16, 16), jnp.float32)   # NCHW input

    outs = mix_transformer_forward(params, x)
    outs = jax.block_until_ready(outs)

    # stage 0: 16x16 -> conv(k=7,s=4,p=3) -> 4x4 ; stage 1: 4x4 -> conv(k=3,s=2,p=1) -> 2x2
    assert outs[0].shape == (2, EMBED_DIMS[0], 4, 4), outs[0].shape
    assert outs[1].shape == (2, EMBED_DIMS[1], 2, 2), outs[1].shape
    assert all(jnp.all(jnp.isfinite(o)) for o in outs)
    print("KERNEL_OK")
</pallas_src>

<mosaic_0001>
module attributes {stable_mosaic.version = 11 : i64} {
  func.func @_matmul_kernel(%arg0: i32, %arg1: i32, %arg2: i32, %arg3: memref<128x256xbf16, #tpu.memory_space<vmem>>, %arg4: memref<256x128xbf16, #tpu.memory_space<vmem>>, %arg5: memref<1x128xbf16, #tpu.memory_space<vmem>>, %arg6: memref<128x128xbf16, #tpu.memory_space<vmem>>, %arg7: memref<128x128xf32, #tpu.memory_space<vmem>>) attributes {dimension_semantics = [#tpu.dimension_semantics<parallel>, #tpu.dimension_semantics<parallel>, #tpu.dimension_semantics<arbitrary>], iteration_bounds = array<i64: 1, 1, 1>, scalar_prefetch = 0 : i64, scratch_operands = 1 : i64, tpu.core_type = #tpu.core_type<tc>, window_params = [{transform_indices = @transform_0, window_bounds = array<i64: 128, 256>}, {transform_indices = @transform_1, window_bounds = array<i64: 256, 128>}, {transform_indices = @transform_2, window_bounds = array<i64: 1, 128>}, {transform_indices = @transform_3, window_bounds = array<i64: 128, 128>}]} {
    %c0_i32 = arith.constant 0 : i32
    %0 = arith.cmpi eq, %arg2, %c0_i32 : i32
    %1 = arith.extui %0 : i1 to i32
    %c0_i32_0 = arith.constant 0 : i32
    %2 = arith.cmpi ne, %1, %c0_i32_0 : i32
    scf.if %2 {
      %cst_10 = arith.constant 0.000000e+00 : f32
      %12 = vector.broadcast %cst_10 : f32 to vector<128x128xf32>
      %c0_11 = arith.constant 0 : index
      %c0_12 = arith.constant 0 : index
      %13 = vector.load %arg7[%c0_11, %c0_12] : memref<128x128xf32, #tpu.memory_space<vmem>>, vector<128x128xf32>
      tpu.vector_store %arg7[%c0_11, %c0_12], %12 {strides = array<i32>} : memref<128x128xf32, #tpu.memory_space<vmem>>, vector<128x128xf32>,
    } else {
    }
    %c0 = arith.constant 0 : index
    %c0_1 = arith.constant 0 : index
    %3 = vector.load %arg7[%c0, %c0_1] : memref<128x128xf32, #tpu.memory_space<vmem>>, vector<128x128xf32>
    %c0_2 = arith.constant 0 : index
    %c0_3 = arith.constant 0 : index
    %4 = vector.load %arg3[%c0_2, %c0_3] : memref<128x256xbf16, #tpu.memory_space<vmem>>, vector<128x256xbf16>
    %c0_4 = arith.constant 0 : index
    %c0_5 = arith.constant 0 : index
    %5 = vector.load %arg4[%c0_4, %c0_5] : memref<256x128xbf16, #tpu.memory_space<vmem>>, vector<256x128xbf16>
    %cst = arith.constant dense<0.000000e+00> : vector<128x128xf32>
    %6 = tpu.matmul %4, %5, %cst {dimension_numbers = #tpu.dot_dimension_numbers<[1], [0], [0], [1], [0, 0, 1, 1], [], []>} : vector<128x256xbf16>, vector<256x128xbf16>, vector<128x128xf32> -> vector<128x128xf32>
    %7 = arith.addf %3, %6 : vector<128x128xf32>
    %c0_6 = arith.constant 0 : index
    %c0_7 = arith.constant 0 : index
    %8 = vector.load %arg7[%c0_6, %c0_7] : memref<128x128xf32, #tpu.memory_space<vmem>>, vector<128x128xf32>
    tpu.vector_store %arg7[%c0_6, %c0_7], %7 {strides = array<i32>} : memref<128x128xf32, #tpu.memory_space<vmem>>, vector<128x128xf32>,
    %c0_i32_8 = arith.constant 0 : i32
    %9 = arith.cmpi eq, %arg2, %c0_i32_8 : i32
    %10 = arith.extui %9 : i1 to i32
    %c0_i32_9 = arith.constant 0 : i32
    %11 = arith.cmpi ne, %10, %c0_i32_9 : i32
    scf.if %11 {
      %c0_10 = arith.constant 0 : index
      %c0_11 = arith.constant 0 : index
      %12 = vector.load %arg7[%c0_10, %c0_11] : memref<128x128xf32, #tpu.memory_space<vmem>>, vector<128x128xf32>
      %c0_12 = arith.constant 0 : index
      %c0_13 = arith.constant 0 : index
      %13 = vector.load %arg5[%c0_12, %c0_13] : memref<1x128xbf16, #tpu.memory_space<vmem>>, vector<1x128xbf16>
      %14 = arith.extf %13 : vector<1x128xbf16> to vector<1x128xf32>
      %15 = vector.broadcast %14 : vector<1x128xf32> to vector<128x128xf32>
      %16 = arith.addf %12, %15 : vector<128x128xf32>
      %17 = arith.truncf %16 : vector<128x128xf32> to vector<128x128xbf16>
      %c0_14 = arith.constant 0 : index
      %c0_15 = arith.constant 0 : index
      %18 = vector.load %arg6[%c0_14, %c0_15] : memref<128x128xbf16, #tpu.memory_space<vmem>>, vector<128x128xbf16>
      tpu.vector_store %arg6[%c0_14, %c0_15], %17 {strides = array<i32>} : memref<128x128xbf16, #tpu.memory_space<vmem>>, vector<128x128xbf16>,
    } else {
    }
    return
  }
  func.func @transform_0(%arg0: i32, %arg1: i32, %arg2: i32) -> (i32, i32) {
    %c0_i32 = arith.constant 0 : i32
    return %arg0, %arg2 : i32, i32
  }
  func.func @transform_1(%arg0: i32, %arg1: i32, %arg2: i32) -> (i32, i32) {
    %c0_i32 = arith.constant 0 : i32
    return %arg2, %arg1 : i32, i32
  }
  func.func @transform_2(%arg0: i32, %arg1: i32, %arg2: i32) -> (i32, i32) {
    %c0_i32 = arith.constant 0 : i32
    %c0_i32_0 = arith.constant 0 : i32
    return %c0_i32, %arg1 : i32, i32
  }
  func.func @transform_3(%arg0: i32, %arg1: i32, %arg2: i32) -> (i32, i32) {
    %c0_i32 = arith.constant 0 : i32
    return %arg0, %arg1 : i32, i32
  }
}

</mosaic_0001>

<bundles_post_ra>
// kernel: tpu_custom_call.1
= control target key start
LH: loop header
LB: loop body
LE: loop exit
PB: predicated region body
PF: predicated region fallthrough
CT: control target
= control target key end

     0   :  { %8 = vsyncpa [#allocation4], 0  ;;  %s972_s0 = inlined_call_operand.hbm [shape: bf16[128,256], index: 0, kind: input, shape index: {}]   ;;  %s973_s1 = inlined_call_operand.hbm [shape: bf16[256,128], index: 1, kind: input, shape index: {}]   ;;  %s974_s2 = inlined_call_operand.vmem [shape: bf16[1,128], index: 2, kind: input, shape index: {}]   ;;  %s975_s3 = inlined_call_operand.hbm [shape: bf16[128,128], index: 3, kind: output, shape index: {}]  }
   0x1   :  { %9 = vsyncpa [#allocation7], 0 }
   0x2   :  { %10 = vsyncpa [#allocation5], 0  ;;  %s882_s12 = smov [#allocation3]   ;;  %s810_s16 = scalar_lea.hbm %s972_s0, 2048 }
   0x3   :  { %s16_s13 = sshll.u32 %s882_s12, 4  ;;  %p811_p0 = scmp.ne.s32.totalorder %s972_s0, %s810_s16  ;;  %s17_s13 = int_to_ptr.vmem [resolvable:$true] %s16_s13 }
   0x4   :  { %p814_p1 = scmp.lt.u32.totalorder %s810_s16, %s972_s0 }
   0x6   :  { %p816_p2 = pnand %p814_p1, %p811_p0 }
   0x8   :  { %819 = shalt.err (!%p816_p2)
}
   0x9   :  { %s820_s21 = scalar_lea.vmem %s17_s13, 2048  ;;  %p825_p4 = scmp.lt.s32.totalorder %s17_s13, %s17_s13 }
   0xa   :  { %p821_p3 = scmp.ne.s32.totalorder %s17_s13, %s820_s21  ;;  %p826_p5 = scmp.lt.s32.totalorder %s820_s21, %s820_s21 }
   0xc   :  { %p827_p6 = por %p826_p5, %p825_p4 }
   0xe   :  { %p828_p7 = pnand %p827_p6, %p821_p3 }
  0x10   :  { %831 = shalt.err (!%p828_p7)
}
  0x11   :  { %s883_s22 = smov 128   ;;  %s884_s23 = smov 8  }
  0x12   :  { %22 = dma.hbm_to_vmem [thread:$0]  %s972_s0, 2048, %s17_s13, [#allocation4], %s883_s22, %s883_s22, %s884_s23  }
  0x13   :  { %s885_s26 = smov [#allocation6]   ;;  %s832_s30 = scalar_lea.hbm %s973_s1, 2048 }
  0x14   :  { %s28_s27 = sshll.u32 %s885_s26, 4  ;;  %p833_p8 = scmp.ne.s32.totalorder %s973_s1, %s832_s30  ;;  %s29_s27 = int_to_ptr.vmem [resolvable:$true] %s28_s27 }
  0x15   :  { %p836_p9 = scmp.lt.u32.totalorder %s832_s30, %s973_s1 }
  0x17   :  { %p838_p10 = pnand %p836_p9, %p833_p8 }
  0x19   :  { %841 = shalt.err (!%p838_p10)
}
  0x1a   :  { %s842_s8 = scalar_lea.vmem %s29_s27, 2048  ;;  %p847_p12 = scmp.lt.s32.totalorder %s29_s27, %s29_s27 }
  0x1b   :  { %p843_p11 = scmp.ne.s32.totalorder %s29_s27, %s842_s8  ;;  %p848_p13 = scmp.lt.s32.totalorder %s842_s8, %s842_s8 }
  0x1d   :  { %p849_p0 = por %p848_p13, %p847_p12 }
  0x1f   :  { %p850_p1 = pnand %p849_p0, %p843_p11 }
  0x21   :  { %853 = shalt.err (!%p850_p1)
}
  0x22   :  { %s886_s0 = smov 64   ;;  %s887_s9 = smov 4  }
  0x23   :  { %34 = dma.hbm_to_vmem [thread:$0]  %s973_s1, 2048, %s29_s27, [#allocation7], %s886_s0, %s886_s0, %s887_s9  }
  0x24   :  { %876 = dma.done.wait [#allocation4], 2048  }
  0x25   :  { %877 = vsyncadd [#allocation4], 4294965248 }
  0x26   :  { %878 = dma.done.wait [#allocation7], 2048  }
  0x27   :  { %879 = vsyncadd [#allocation7], 4294965248  ;;  %v770_v0 = vld [vmem:[#allocation6 + $0x40] sm:$0xff]   ;;  %v772_v2 = vld [vmem:[#allocation6 + $0x48] sm:$0xff]   ;;  %v454_v32 = vlaneseq }
  0x28   :  { %v771_v1 = vld [vmem:[#allocation6] sm:$0xff]   ;;  %683 = vmatprep.subr.bf16.mxu0 %v770_v0  ;;  %747 = vmatprep.subr.bf16.mxu1 %v770_v0  ;;  %v773_v3 = vld [vmem:[#allocation6 + $0x8] sm:$0xff]   ;;  %v774_v4 = vld [vmem:[#allocation6 + $0x50] sm:$0xff]  }
  0x29   :  { %684 = vmatpush3.bf16.msra.mxu0 %v771_v1  ;;  %755 = vmatpush3.bf16.msra.mxu1 %v771_v1  ;;  %v775_v5 = vld [vmem:[#allocation6 + $0x10] sm:$0xff]   ;;  %v776_v6 = vld [vmem:[#allocation6 + $0x58] sm:$0xff]   ;;  %v778_v8 = vld [vmem:[#allocation6 + $0x60] sm:$0xff]   ;;  %v455_v33 = vshrl.u32 %v454_v32, 7 }
  0x2a   :  { %685 = vmatprep.subr.bf16.mxu0 %v772_v2  ;;  %748 = vmatprep.subr.bf16.mxu1 %v772_v2  ;;  %v777_v7 = vld [vmem:[#allocation6 + $0x18] sm:$0xff]   ;;  %v779_v9 = vld [vmem:[#allocation6 + $0x20] sm:$0xff]   ;;  %v780_v10 = vld [vmem:[#allocation6 + $0x68] sm:$0xff]  }
  0x2b   :  { %v788_v11 = vld [vmem:[#allocation3 + $0x4] ss:$8 sps:$4 sm:$0xff]   ;;  %v782_v14 = vld [vmem:[#allocation6 + $0x70] sm:$0xff]   ;;  %v784_v16 = vld [vmem:[#allocation6 + $0x78] sm:$0xff]   ;;  %v456_v36 = vsub.s32 0, %v455_v33 }
  0x2c   :  { %v791_v12 = vld [vmem:[#allocation3 + $0x44] ss:$8 sps:$4 sm:$0xff]   ;;  %336 = vmatprep.mubr.bf16.mxu0 %v788_v11  ;;  %v783_v15 = vld [vmem:[#allocation6 + $0x30] sm:$0xff]   ;;  %v785_v17 = vld [vmem:[#allocation6 + $0x38] sm:$0xff]  }
  0x2d   :  { %686 = vmatpush3.bf16.msra.mxu0 %v773_v3  ;;  %756 = vmatpush3.bf16.msra.mxu1 %v773_v3  ;;  %v781_v13 = vld [vmem:[#allocation6 + $0x28] sm:$0xff]   ;;  %v792_v20 = vld [vmem:[#allocation3 + $0x14] ss:$8 sps:$4 sm:$0xff]   ;;  %v796_v22 = vld [vmem:[#allocation3 + $0x10] ss:$8 sps:$4 sm:$0xff]  }
  0x2e   :  { %687 = vmatprep.subr.bf16.mxu0 %v774_v4  ;;  %749 = vmatprep.subr.bf16.mxu1 %v774_v4  ;;  %v786_v18 = vld [vmem:[#allocation3] ss:$8 sps:$4 sm:$0xff]   ;;  %v794_v21 = vld [vmem:[#allocation3 + $0x54] ss:$8 sps:$4 sm:$0xff]   ;;  %v797_v23 = vld [vmem:[#allocation3 + $0x50] ss:$8 sps:$4 sm:$0xff]  }
  0x2f   :  { %368 = vmatprep.mubr.bf16.mxu1 %v791_v12  ;;  %v789_v19 = vld [vmem:[#allocation3 + $0x40] ss:$8 sps:$4 sm:$0xff]   ;;  %v798_v24 = vld [vmem:[#allocation3 + $0x24] ss:$8 sps:$4 sm:$0xff]   ;;  %v804_v28 = vld [vmem:[#allocation3 + $0x34] ss:$8 sps:$4 sm:$0xff]  }
  0x30   :  { %v800_v25 = vld [vmem:[#allocation3 + $0x64] ss:$8 sps:$4 sm:$0xff]   ;;  %v802_v26 = vld [vmem:[#allocation3 + $0x20] ss:$8 sps:$4 sm:$0xff]   ;;  %v806_v29 = vld [vmem:[#allocation3 + $0x74] ss:$8 sps:$4 sm:$0xff]  }
  0x31   :  { %688 = vmatpush3.bf16.msra.mxu0 %v775_v5  ;;  %757 = vmatpush3.bf16.msra.mxu1 %v775_v5  ;;  %v803_v27 = vld [vmem:[#allocation3 + $0x60] ss:$8 sps:$4 sm:$0xff]   ;;  %v808_v30 = vld [vmem:[#allocation3 + $0x30] ss:$8 sps:$4 sm:$0xff]  }
  0x32   :  { %689 = vmatprep.subr.bf16.mxu0 %v776_v6  ;;  %750 = vmatprep.subr.bf16.mxu1 %v776_v6  ;;  %v809_v31 = vld [vmem:[#allocation3 + $0x70] ss:$8 sps:$4 sm:$0xff]   ;;  %v452_v34 = vld [vmem:[%s974_s2] sm:$0x1]  ;;  %s888_s2 = smov [#allocation8]  }
  0x33   :  { %v453_v35 = vunpack.c.l.bf16 %v452_v34  ;;  %s559_s13 = sshll.u32 %s888_s2, 4  ;;  %s560_s13 = int_to_ptr.vmem [resolvable:$true] %s559_s13 }
  0x34   :  { %s854_s14 = scalar_lea.vmem %s560_s13, 1024  ;;  %p859_p3 = scmp.lt.s32.totalorder %s560_s13, %s560_s13 }
  0x35   :  { %690 = vmatpush3.bf16.msra.mxu0 %v777_v7  ;;  %758 = vmatpush3.bf16.msra.mxu1 %v777_v7  ;;  %v939_v42 = vrot.slane %v453_v35, %v456_v36  ;;  %p855_p2 = scmp.ne.s32.totalorder %s560_s13, %s854_s14  ;;  %p860_p4 = scmp.lt.s32.totalorder %s854_s14, %s854_s14 }
  0x36   :  { %691 = vmatprep.subr.bf16.mxu0 %v778_v8  ;;  %751 = vmatprep.subr.bf16.mxu1 %v778_v8 }
  0x37   :  { %p861_p5 = por %p860_p4, %p859_p3 }
  0x39   :  { %692 = vmatpush3.bf16.msra.mxu0 %v779_v9  ;;  %759 = vmatpush3.bf16.msra.mxu1 %v779_v9  ;;  %p862_p6 = pnand %p861_p5, %p855_p2 }
  0x3a   :  { %693 = vmatprep.subr.bf16.mxu0 %v780_v10  ;;  %752 = vmatprep.subr.bf16.mxu1 %v780_v10 }
  0x3d   :  { %694 = vmatpush3.bf16.msra.mxu0 %v781_v13  ;;  %760 = vmatpush3.bf16.msra.mxu1 %v781_v13 }
  0x3e   :  { %695 = vmatprep.subr.bf16.mxu0 %v782_v14  ;;  %753 = vmatprep.subr.bf16.mxu1 %v782_v14 }
  0x41   :  { %696 = vmatpush3.bf16.msra.mxu0 %v783_v15  ;;  %761 = vmatpush3.bf16.msra.mxu1 %v783_v15 }
  0x42   :  { %697 = vmatprep.subr.bf16.mxu0 %v784_v16  ;;  %754 = vmatprep.subr.bf16.mxu1 %v784_v16 }
  0x45   :  { %698 = vmatpush3.bf16.msra.mxu0 %v785_v17  ;;  %762 = vmatpush3.bf16.msra.mxu1 %v785_v17 }
  0x48   :  { %337 = vmatmul.mubr.bf16.vlgmr.msra.gmra.mrb[0].mxu0 %v786_v18  ;;  %369 = vmatmul.mubr.bf16.vlgmr.msra.gmra.mrb[0].mxu1 %v789_v19 }
  0x49   :  { %344 = vmatprep.mubr.bf16.mxu0 %v792_v20  ;;  %376 = vmatprep.mubr.bf16.mxu1 %v794_v21 }
  0x50   :  { %345 = vmatmul.mubr.bf16.gmra.mrb[4].mxu0 %v796_v22  ;;  %377 = vmatmul.mubr.bf16.gmra.mrb[4].mxu1 %v797_v23 }
  0x51   :  { %352 = vmatprep.mubr.bf16.mxu0 %v798_v24  ;;  %384 = vmatprep.mubr.bf16.mxu1 %v800_v25 }
  0x58   :  { %353 = vmatmul.mubr.bf16.gmra.mrb[8].mxu0 %v802_v26  ;;  %385 = vmatmul.mubr.bf16.gmra.mrb[8].mxu1 %v803_v27 }
  0x59   :  { %360 = vmatprep.mubr.bf16.mxu0 %v804_v28  ;;  %392 = vmatprep.mubr.bf16.mxu1 %v806_v29 }
  0x60   :  { %361 = vmatmul.mubr.bf16.gmra.mrb[12].mxu0 %v808_v30  ;;  %393 = vmatmul.mubr.bf16.gmra.mrb[12].mxu1 %v809_v31 }
 0x11b   :  { %v699_v37 = vpop.f32.mrb[0].mxu0  ;;  %v723_v38 = vpop.f32.mrb[0].mxu1 }
 0x11c   :  { %v700_v39 = vpop.f32.mrb[1].mxu0  ;;  %v724_v40 = vpop.f32.mrb[1].mxu1 }
 0x11d   :  { %v701_v41 = vadd.f32 %v700_v39, %v699_v37  ;;  %v725_v43 = vadd.f32 %v724_v40, %v723_v38  ;;  %v702_v44 = vpop.f32.mrb[2].mxu0  ;;  %v726_v45 = vpop.f32.mrb[2].mxu1 }
 0x11e   :  { %v703_v46 = vpop.f32.mrb[3].mxu0  ;;  %v727_v47 = vpop.f32.mrb[3].mxu1 }
 0x11f   :  { %v704_v48 = vadd.f32 %v703_v46, %v702_v44  ;;  %v728_v49 = vadd.f32 %v727_v47, %v726_v45  ;;  %v458_v50 = vadd.f32 %v701_v41, %v939_v42  ;;  %v466_v51 = vadd.f32 %v725_v43, %v939_v42 }
 0x121   :  { %v459_v52 = vadd.f32 %v704_v48, %v939_v42  ;;  %v467_v53 = vadd.f32 %v728_v49, %v939_v42 }
 0x123   :  { %v639_v54 = vpack.c.bf16 %v459_v52, %v458_v50  ;;  %v659_v55 = vpack.c.bf16 %v467_v53, %v466_v51  ;;  %v705_v56 = vpop.f32.mrb[4].mxu0  ;;  %v729_v57 = vpop.f32.mrb[4].mxu1 }
 0x124   :  { %v706_v58 = vpop.f32.mrb[5].mxu0  ;;  %v730_v59 = vpop.f32.mrb[5].mxu1 }
 0x125   :  { %640 = vst [vmem:[#allocation8] sm:$0xff] %v639_v54   ;;  %679 = vst [vmem:[#allocation8 + $0x20] sm:$0xff] %v659_v55   ;;  %v707_v60 = vadd.f32 %v706_v58, %v705_v56  ;;  %v731_v61 = vadd.f32 %v730_v59, %v729_v57  ;;  %v708_v62 = vpop.f32.mrb[6].mxu0  ;;  %v732_v63 = vpop.f32.mrb[6].mxu1 }
 0x126   :  { %v709_v0 = vpop.f32.mrb[7].mxu0  ;;  %v733_v1 = vpop.f32.mrb[7].mxu1 }
 0x127   :  { %v710_v2 = vadd.f32 %v709_v0, %v708_v62  ;;  %v734_v3 = vadd.f32 %v733_v1, %v732_v63  ;;  %v460_v4 = vadd.f32 %v707_v60, %v939_v42  ;;  %v468_v5 = vadd.f32 %v731_v61, %v939_v42 }
 0x129   :  { %v461_v6 = vadd.f32 %v710_v2, %v939_v42  ;;  %v469_v7 = vadd.f32 %v734_v3, %v939_v42 }
 0x12b   :  { %v644_v8 = vpack.c.bf16 %v461_v6, %v460_v4  ;;  %v664_v9 = vpack.c.bf16 %v469_v7, %v468_v5  ;;  %v711_v10 = vpop.f32.mrb[8].mxu0  ;;  %v735_v11 = vpop.f32.mrb[8].mxu1 }
 0x12c   :  { %v712_v12 = vpop.f32.mrb[9].mxu0  ;;  %v736_v13 = vpop.f32.mrb[9].mxu1 }
 0x12d   :  { %676 = vst [vmem:[#allocation8 + $0x8] sm:$0xff] %v644_v8   ;;  %680 = vst [vmem:[#allocation8 + $0x28] sm:$0xff] %v664_v9   ;;  %v713_v14 = vadd.f32 %v712_v12, %v711_v10  ;;  %v737_v15 = vadd.f32 %v736_v13, %v735_v11  ;;  %v714_v16 = vpop.f32.mrb[10].mxu0  ;;  %v738_v17 = vpop.f32.mrb[10].mxu1 }
 0x12e   :  { %v715_v18 = vpop.f32.mrb[11].mxu0  ;;  %v739_v19 = vpop.f32.mrb[11].mxu1 }
 0x12f   :  { %v716_v20 = vadd.f32 %v715_v18, %v714_v16  ;;  %v740_v21 = vadd.f32 %v739_v19, %v738_v17  ;;  %v462_v22 = vadd.f32 %v713_v14, %v939_v42  ;;  %v470_v23 = vadd.f32 %v737_v15, %v939_v42 }
 0x131   :  { %v463_v24 = vadd.f32 %v716_v20, %v939_v42  ;;  %v471_v25 = vadd.f32 %v740_v21, %v939_v42 }
 0x133   :  { %v649_v26 = vpack.c.bf16 %v463_v24, %v462_v22  ;;  %v669_v27 = vpack.c.bf16 %v471_v25, %v470_v23  ;;  %v717_v28 = vpop.f32.mrb[12].mxu0  ;;  %v741_v29 = vpop.f32.mrb[12].mxu1 }
 0x134   :  { %v718_v30 = vpop.f32.mrb[13].mxu0  ;;  %v742_v31 = vpop.f32.mrb[13].mxu1 }
 0x135   :  { %677 = vst [vmem:[#allocation8 + $0x10] sm:$0xff] %v649_v26   ;;  %681 = vst [vmem:[#allocation8 + $0x30] sm:$0xff] %v669_v27   ;;  %v719_v32 = vadd.f32 %v718_v30, %v717_v28  ;;  %v743_v33 = vadd.f32 %v742_v31, %v741_v29  ;;  %v720_v34 = vpop.f32.mrb[14].mxu0  ;;  %v744_v35 = vpop.f32.mrb[14].mxu1 }
 0x136   :  { %v721_v36 = vpop.f32.mrb[15].mxu0  ;;  %v745_v37 = vpop.f32.mrb[15].mxu1 }
 0x137   :  { %v722_v38 = vadd.f32 %v721_v36, %v720_v34  ;;  %v746_v39 = vadd.f32 %v745_v37, %v744_v35  ;;  %v464_v40 = vadd.f32 %v719_v32, %v939_v42  ;;  %v472_v41 = vadd.f32 %v743_v33, %v939_v42 }
 0x139   :  { %v465_v43 = vadd.f32 %v722_v38, %v939_v42  ;;  %v473_v44 = vadd.f32 %v746_v39, %v939_v42 }
 0x13b   :  { %v654_v45 = vpack.c.bf16 %v465_v43, %v464_v40  ;;  %v674_v46 = vpack.c.bf16 %v473_v44, %v472_v41 }
 0x13d   :  { %678 = vst [vmem:[#allocation8 + $0x18] sm:$0xff] %v654_v45   ;;  %682 = vst [vmem:[#allocation8 + $0x38] sm:$0xff] %v674_v46  }
 0x13e   :  { %865 = shalt.err (!%p862_p6)
}
 0x13f   :  { %s866_s17 = scalar_lea.hbm %s975_s3, 1024 }
 0x140   :  { %p867_p7 = scmp.ne.s32.totalorder %s975_s3, %s866_s17  ;;  %p870_p8 = scmp.lt.u32.totalorder %s866_s17, %s975_s3 }
 0x142   :  { %p872_p9 = pnand %p870_p8, %p867_p7 }
 0x144   :  { %875 = shalt.err (!%p872_p9)
}
 0x145   :  { %565 = dma.vmem_to_hbm [thread:$0]  %s560_s13, 1024, %s975_s3, [#allocation5], %s886_s0, %s886_s0, %s887_s9  }
 0x146   :  { %880 = dma.done.wait [#allocation5], 1024  }
 0x147   :  { %881 = vsyncadd [#allocation5], 4294966272 }
 0x148   :  { %569 = vsyncpa [#allocation4], 1 }
 0x149   :  { %570 = vsyncpa [#allocation7], 1 }
 0x14a   :  { %571 = vsyncpa [#allocation5], 1 }

</bundles_post_ra>
